<compile_context>
chip_gen: v5e
topology: v5e:2x2
jax: 0.10.0
libtpu: 0.0.40
codegen_flags: <defaults>
</compile_context>

<pallas_src>
import jax
import jax.numpy as jnp
from jax.experimental import pallas as pl
from jax.experimental.pallas import tpu as pltpu


def _embed_kernel(patch_ref, w_ref, pos_ref, out_ref):
    """One (patch-tile, batch) grid step.

    patch_ref: (TN, Kp)  bf16 patch tile
    w_ref:     (Kp, D)   bf16 GEMM weight, VMEM-resident across the whole grid
    pos_ref:   (TN, D)   bf16 position embedding with conv bias pre-folded,
                         resident across the inner (batch) grid axis
    out_ref:   (TN, D)   out dtype
    """
    y = jnp.dot(patch_ref[...], w_ref[...],
                preferred_element_type=jnp.float32)              # MXU, f32 acc
    out_ref[...] = (y + pos_ref[...].astype(jnp.float32)).astype(out_ref.dtype)


def siglip_vision_embeddings(pixel_values, conv_weight, conv_bias, pos_embedding,
                             patch_size, *, tile_n=512,
                             compute_dtype=jnp.bfloat16, out_dtype=jnp.bfloat16):
    """pixel_values: (B, C, H, W); conv_weight: (D, C, P, P); conv_bias: (D,);
    pos_embedding: (N, D). Returns (B, N, D) in `out_dtype` (default bf16)."""
    B, C, H, W = pixel_values.shape
    D = conv_weight.shape[0]
    P = patch_size
    Hp, Wp = H // P, W // P
    N = Hp * Wp
    K = C * P * P
    K_pad = ((K + 127) // 128) * 128

    # --- Glue (XLA): patch extraction. bf16 cast first halves its HBM traffic.
    # TODO(synk): fusing this NCHW patchify into the kernel needs a manual
    # strided DMA; kept as one XLA transpose over the bf16 copy.
    x = pixel_values.astype(compute_dtype)
    x = x.reshape(B, C, Hp, P, Wp, P)
    x = jnp.transpose(x, (0, 2, 4, 1, 3, 5)).reshape(B, N, K)    # (B, N, K)
    if K_pad != K:
        x = jnp.pad(x, ((0, 0), (0, 0), (0, K_pad - K)))

    # --- Glue (XLA, static): Conv2d weight (D,C,P,P) -> GEMM weight (K_pad, D).
    w_flat = conv_weight.reshape(D, K).T.astype(compute_dtype)   # (K, D)
    if K_pad != K:
        w_flat = jnp.pad(w_flat, ((0, K_pad - K), (0, 0)))

    # Fold conv bias into the position table in f32, store bf16 (half the bytes).
    pos_plus_bias = (pos_embedding.astype(jnp.float32)
                     + conv_bias.astype(jnp.float32)[None, :]).astype(compute_dtype)

    # --- Patch-dim tiling.
    tn = min(tile_n, N)
    if B == 1 and tn >= N and N > 16:
        # Single-step grid gives the pipeliner nothing to overlap: split into >=2.
        tn = min(N, (((N + 1) // 2 + 15) // 16) * 16)
    if tn < N:
        tn = max(16, (tn // 16) * 16)      # bf16 packs sublanes in groups of 16
    n_tiles = pl.cdiv(N, tn)

    out_itemsize = jnp.dtype(out_dtype).itemsize
    cost = pl.CostEstimate(
        flops=2 * B * N * K_pad * D,
        transcendentals=0,
        bytes_accessed=(B * N * K_pad * 2          # patches (bf16)
                        + K_pad * D * 2            # weight  (bf16, resident)
                        + N * D * 2                # pos+bias (bf16, read once)
                        + B * N * D * out_itemsize))

    out = pl.pallas_call(
        _embed_kernel,
        out_shape=jax.ShapeDtypeStruct((B, N, D), out_dtype),
        grid=(n_tiles, B),                 # batch innermost -> pos tile stays resident
        in_specs=[
            pl.BlockSpec((None, tn, K_pad), lambda n, b: (b, n, 0)),  # patch tile
            pl.BlockSpec((K_pad, D), lambda n, b: (0, 0)),            # weight (resident)
            pl.BlockSpec((tn, D), lambda n, b: (n, 0)),               # pos+bias
        ],
        out_specs=pl.BlockSpec((None, tn, D), lambda n, b: (b, n, 0)),
        compiler_params=pltpu.CompilerParams(
            dimension_semantics=("parallel", "parallel")),            # v7x megacore
        cost_estimate=cost,
    )(x, w_flat, pos_plus_bias)
    return out


def _reference(pixel_values, conv_weight, conv_bias, pos_embedding, patch_size,
               compute_dtype=jnp.bfloat16):
    # Pure-JAX reference: conv == patchify + einsum, with the same bf16 operand
    # cast / f32 accumulate as the kernel.
    B, C, H, W = pixel_values.shape
    D = conv_weight.shape[0]
    P = patch_size
    Hp, Wp = H // P, W // P
    x = pixel_values.astype(compute_dtype).reshape(B, C, Hp, P, Wp, P)
    x = jnp.transpose(x, (0, 2, 4, 1, 3, 5)).reshape(B, Hp * Wp, C * P * P)
    w = conv_weight.reshape(D, C * P * P).astype(compute_dtype)
    y = jnp.einsum("bnk,dk->bnd", x, w, preferred_element_type=jnp.float32)
    y = y + conv_bias[None, None, :].astype(jnp.float32)
    return y + pos_embedding[None, :, :].astype(jnp.float32)


if __name__ == "__main__":
    # Small config consistent with the module: image 16x16, patch 4 -> 16 patches.
    # (At this toy size D=32 < 128 means masked partial stores; real SigLIP
    # D=768/1152 are lane-dense multiples of 128.)
    batch = 2
    num_channels = 4
    image_size = 16
    patch_size = 4
    hidden_size = 32
    num_patches = (image_size // patch_size) ** 2

    key = jax.random.PRNGKey(0)
    k_px, k_w, k_b, k_pos = jax.random.split(key, 4)

    pixel_values = jax.random.normal(
        k_px, (batch, num_channels, image_size, image_size), dtype=jnp.float32)
    # Deterministic synthetic parameters (shapes from nn.Conv2d / nn.Embedding).
    conv_weight = 0.05 * jax.random.normal(
        k_w, (hidden_size, num_channels, patch_size, patch_size), dtype=jnp.float32)
    conv_bias = 0.01 * jax.random.normal(k_b, (hidden_size,), dtype=jnp.float32)
    pos_embedding = 0.02 * jax.random.normal(
        k_pos, (num_patches, hidden_size), dtype=jnp.float32)

    out = siglip_vision_embeddings(
        pixel_values, conv_weight, conv_bias, pos_embedding, patch_size)
    out = jax.block_until_ready(out)

    ref = _reference(pixel_values, conv_weight, conv_bias, pos_embedding, patch_size)
    assert out.shape == (batch, num_patches, hidden_size)
    assert out.dtype == jnp.bfloat16
    assert jnp.allclose(out.astype(jnp.float32), ref, atol=2e-2, rtol=2e-2)

    print("KERNEL_OK")
</pallas_src>

<mosaic_0001>
module attributes {stable_mosaic.version = 11 : i64} {
  func.func @_embed_kernel(%arg0: i32, %arg1: i32, %arg2: memref<1x16x128xbf16, #tpu.memory_space<vmem>>, %arg3: memref<128x32xbf16, #tpu.memory_space<vmem>>, %arg4: memref<16x32xbf16, #tpu.memory_space<vmem>>, %arg5: memref<1x16x32xbf16, #tpu.memory_space<vmem>>) attributes {dimension_semantics = [#tpu.dimension_semantics<parallel>, #tpu.dimension_semantics<parallel>], iteration_bounds = array<i64: 1, 2>, scalar_prefetch = 0 : i64, scratch_operands = 0 : i64, tpu.core_type = #tpu.core_type<tc>, window_params = [{transform_indices = @transform_0, window_bounds = array<i64: 1, 16, 128>}, {pipeline_mode = #tpu.pipeline_mode<synchronous>, transform_indices = @transform_1, window_bounds = array<i64: 128, 32>}, {transform_indices = @transform_2, window_bounds = array<i64: 16, 32>}, {transform_indices = @transform_3, window_bounds = array<i64: 1, 16, 32>}]} {
    %c0 = arith.constant 0 : index
    %c0_0 = arith.constant 0 : index
    %c0_1 = arith.constant 0 : index
    %0 = vector.load %arg2[%c0, %c0_0, %c0_1] : memref<1x16x128xbf16, #tpu.memory_space<vmem>>, vector<1x16x128xbf16>
    %1 = vector.shape_cast %0 : vector<1x16x128xbf16> to vector<16x128xbf16>
    %c0_2 = arith.constant 0 : index
    %c0_3 = arith.constant 0 : index
    %2 = vector.load %arg3[%c0_2, %c0_3] : memref<128x32xbf16, #tpu.memory_space<vmem>>, vector<128x32xbf16>
    %cst = arith.constant dense<0.000000e+00> : vector<16x32xf32>
    %3 = tpu.matmul %1, %2, %cst {dimension_numbers = #tpu.dot_dimension_numbers<[1], [0], [0], [1], [0, 0, 1, 1], [], []>} : vector<16x128xbf16>, vector<128x32xbf16>, vector<16x32xf32> -> vector<16x32xf32>
    %c0_4 = arith.constant 0 : index
    %c0_5 = arith.constant 0 : index
    %4 = vector.load %arg4[%c0_4, %c0_5] : memref<16x32xbf16, #tpu.memory_space<vmem>>, vector<16x32xbf16>
    %5 = arith.extf %4 : vector<16x32xbf16> to vector<16x32xf32>
    %6 = arith.addf %3, %5 : vector<16x32xf32>
    %7 = arith.truncf %6 : vector<16x32xf32> to vector<16x32xbf16>
    %c0_6 = arith.constant 0 : index
    %c0_7 = arith.constant 0 : index
    %c0_8 = arith.constant 0 : index
    %8 = vector.load %arg5[%c0_6, %c0_7, %c0_8] : memref<1x16x32xbf16, #tpu.memory_space<vmem>>, vector<1x16x32xbf16>
    %9 = vector.shape_cast %8 : vector<1x16x32xbf16> to vector<16x32xbf16>
    %10 = vector.shape_cast %7 : vector<16x32xbf16> to vector<1x16x32xbf16>
    tpu.vector_store %arg5[%c0_6, %c0_7, %c0_8], %10 {strides = array<i32>} : memref<1x16x32xbf16, #tpu.memory_space<vmem>>, vector<1x16x32xbf16>,
    return
  }
  func.func @transform_0(%arg0: i32, %arg1: i32) -> (i32, i32, i32) {
    %c0_i32 = arith.constant 0 : i32
    %c0_i32_0 = arith.constant 0 : i32
    return %arg1, %arg0, %c0_i32 : i32, i32, i32
  }
  func.func @transform_1(%arg0: i32, %arg1: i32) -> (i32, i32) {
    %c0_i32 = arith.constant 0 : i32
    %c0_i32_0 = arith.constant 0 : i32
    %c0_i32_1 = arith.constant 0 : i32
    return %c0_i32, %c0_i32_0 : i32, i32
  }
  func.func @transform_2(%arg0: i32, %arg1: i32) -> (i32, i32) {
    %c0_i32 = arith.constant 0 : i32
    %c0_i32_0 = arith.constant 0 : i32
    return %arg0, %c0_i32 : i32, i32
  }
  func.func @transform_3(%arg0: i32, %arg1: i32) -> (i32, i32, i32) {
    %c0_i32 = arith.constant 0 : i32
    %c0_i32_0 = arith.constant 0 : i32
    return %arg1, %arg0, %c0_i32 : i32, i32, i32
  }
}

</mosaic_0001>

<bundles_post_ra>
// kernel: tpu_custom_call.1
= control target key start
LH: loop header
LB: loop body
LE: loop exit
PB: predicated region body
PF: predicated region fallthrough
CT: control target
= control target key end

     0   :  { %8 = vsyncpa [#allocation3], 0  ;;  %s777_s0 = inlined_call_operand.vmem [shape: bf16[2,16,128], index: 0, kind: input, shape index: {}]   ;;  %s778_s1 = inlined_call_operand.vmem [shape: bf16[128,32], index: 1, kind: input, shape index: {}]   ;;  %s779_s2 = inlined_call_operand.vmem [shape: bf16[16,32], index: 2, kind: input, shape index: {}]   ;;  %s780_s3 = inlined_call_operand.hbm [shape: bf16[2,16,32], index: 3, kind: output, shape index: {}]  }
   0x1   :  { %10 = vsyncpa [#allocation3 + $0x1], 0  ;;  %s653_s12 = smov 0   ;;  %s655_s13 = smov 0  }
   0x2   :  { %s657_s14 = smov 0   ;;  %s659_s15 = smov 0  }
   0x3   :  { %s661_s16 = smov 0   ;;  %s663_s17 = smov 0  }
   0x4 LB: > { %s429_s18 = sadd.s32 4294967295, %s629_s17   ;;  %s430_s19 = sadd.s32 4294967294, %s629_s17   ;;  %s629_s17 = sphi %s663_s17, %s16_s17   ;;  %s625_s16 = sphi %s661_s16, %s787_s16   ;;  %s621_s15 = sphi %s659_s15, %s786_s15   ;;  %s617_s14 = sphi %s657_s14, %s785_s14   ;;  %s613_s13 = sphi %s655_s13, %s784_s13   ;;  %s609_s12 = sphi %s653_s12, %s783_s12  }
   0x5   : > { %s25_s20 = sadd.s32 1, %s625_s16  ;;  %s112_s21 = sadd.s32 1, %s617_s14 }
   0x6   : > { %p26_p0 = scmp.ge.s32.totalorder %s25_s20, 2  ;;  %p122_p1 = scmp.ne.s32.totalorder %s617_s14, %s613_s13 }
   0x7   : > { %p123_p2 = scmp.eq.s32.totalorder %s429_s18, 1  ;;  %p128_p3 = scmp.ne.s32.totalorder %s613_s13, %s609_s12 }
   0x8   : > { %s789_s20 = smov (%p26_p0, %s25_s20), 0  ;;  %p129_p5 = scmp.eq.s32.totalorder %s430_s19, 1 }
   0x9   : > { %p693_p4 = por %p123_p2, %p122_p1  ;;  %s107_s23 = ssub.s32 %s625_s16, %s789_s20 }
   0xa   : > { %p434_p6 = scmp.ge.s32.totalorder %s629_s17, 1  ;;  %p110_p7 = scmp.eq.s32.totalorder %s107_s23, 0 }
   0xb   : > { %p700_p8 = por %p129_p5, %p128_p3  ;;  %p172_p9 = scmp.lt.s32.totalorder %s629_s17, 3 }
   0xc   : > { %s706_s25 = scalar_select %p110_p7, %s617_s14, %s112_s21  }
   0xd   : > { %p173_p10 = pnand %p434_p6, %p172_p9 }
   0xe   : > { %p206_p11 = scmp.lt.s32.totalorder (!%p173_p10), %s621_s15, 1  ;;  %s202_s5 = sand.u32 (!%p173_p10), 1, %s613_s13  }
   0xf   : > { %176 = sbr.rel (%p173_p10) target bundleno = 194 (0xc2), region = 32  ;;  %s435_s6 = sshll.u32 (!%p173_p10), %s202_s5, 3 }
  0x10   : > { %s489_s7 = sshll.u32 (!%p173_p10), %s621_s15, 3  ;;  %s571_s28 = scalar_lea.hbm (!%p173_p10), %s780_s3, 16 }
  0x11   : > { %s331_s10 = scalar_lea.hbm (!%p173_p10), %s780_s3, %s489_s7 }
  0x12   : > { %s334_s19 = sshll.u32 (!%p173_p10), %s331_s10, 4  ;;  %s335_s19 = int_to_ptr.hbm [resolvable:$true] %s334_s19 }
  0x14   : > { %v488_v0 = vld [vmem:[%s778_s1 + $0x38] sm:$0xff]  ;;  %v487_v1 = vld [vmem:[%s778_s1 + $0x30] sm:$0xff]  ;;  %v486_v2 = vld [vmem:[%s778_s1 + $0x28] sm:$0xff]  ;;  %s207_s11 = scalar_select %p206_p11, %s621_s15, 1  ;;  %vm314_vm0 = vcmask 257024  }
  0x15   : > { %298 = vmatpush.bf16.msra.mxu0 %v488_v0  ;;  %v485_v3 = vld [vmem:[%s778_s1 + $0x20] sm:$0xff]  ;;  %v484_v4 = vld [vmem:[%s778_s1 + $0x18] sm:$0xff]  ;;  %v483_v5 = vld [vmem:[%s778_s1 + $0x10] sm:$0xff]  ;;  %s565_s15 = sshra.s32 %s335_s19, 4  ;;  %s566_s15 = int_to_ptr.hbm [resolvable:$true] %s565_s15 }
  0x16   : > { %v482_v6 = vld [vmem:[%s778_s1 + $0x8] sm:$0xff]  ;;  %s479_s21 = sshll.u32 %s207_s11, 3  ;;  %v481_v7 = vld [vmem:[%s778_s1] sm:$0xff]  ;;  %s204_s11 = scalar_lea.vmem [#allocation2], %s435_s6 }
  0x17   : > { %s213_s29 = scalar_lea.vmem %s777_s0, %s479_s21  ;;  %v491_v9 = vld [vmem:[%s779_s2] sm:$0xff]   ;;  %s332_s18 = sshll.u32 %s204_s11, 4  ;;  %s333_s18 = int_to_ptr.vmem [resolvable:$true] %s332_s18 }
  0x18   : > { %v480_v8 = vld [vmem:[%s213_s29] sm:$0xff]  ;;  %v492_v10 = vunpack.c.l.bf16 %v491_v9  ;;  %v493_v14 = vunpack.c.h.bf16 %v491_v9  ;;  %s318_s21 = scalar_lea.sflag [#allocation3], %s202_s5  ;;  %s567_s23 = scalar_lea.hbm %s566_s15, 8 }
  0x19   : > { %299 = vmatpush.bf16.msra.mxu0 %v487_v1  ;;  %p568_p12 = scmp.ne.s32.totalorder %s566_s15, %s567_s23  ;;  %p572_p1 = scmp.lt.s32.totalorder %s566_s15, %s780_s3 }
  0x1a   : > { %p573_p2 = scmp.lt.s32.totalorder %s571_s28, %s567_s23 }
  0x1b   : > { %p569_p13 = pnand %p568_p12, %p693_p4 }
  0x1c   : > { %p574_p3 = por %p573_p2, %p572_p1 }
  0x1d   : > { %300 = vmatpush.bf16.msra.mxu0 %v486_v2  ;;  %p570_p0 = pneg %p569_p13 }
  0x1f   : > { %p575_p5 = pnand %p574_p3, %p570_p0 }
  0x21   : > { %301 = vmatpush.bf16.msra.mxu0 %v485_v3 }
  0x25   : > { %302 = vmatpush.bf16.msra.mxu0 %v484_v4 }
  0x29   : > { %303 = vmatpush.bf16.msra.mxu0 %v483_v5 }
  0x2d   : > { %304 = vmatpush.bf16.msra.mxu0 %v482_v6 }
  0x31   : > { %305 = vmatpush.bf16.msra.mxu0 %v481_v7 }
  0x34   : > { %306 = vmatmul.bf16.vlgmr.msra.gmra.mxu0 %v480_v8 }
  0xb1   : > { %v307_v11 = vpop.f32.mrf.mxu0 }
  0xb2   : > { %v308_v12 = vadd.f32 %v492_v10, %v307_v11 }
  0xb4   : > { %v312_v13 = vpack.c.bf16 %v308_v12, %v308_v12 }
  0xb6   : > { %315 = vst.msk [vmem:[%s204_s11] sm:$0xf] %vm314_vm0, %v312_v13 }
  0xb9   : > { %v309_v15 = vpop.f32.mrf.mxu0 }
  0xba   : > { %v310_v16 = vadd.f32 %v493_v14, %v309_v15 }
  0xbc   : > { %v313_v17 = vpack.c.bf16 %v310_v16, %v310_v16 }
  0xbe   : > { %316 = vst.msk [vmem:[%s204_s11 + $0x4] sm:$0xf] %vm314_vm0, %v313_v17 }
  0xbf   : > { %578 = shalt.err (!%p575_p5)
}
  0xc0   : > { %s631_s4 = smov 64   ;;  %s632_s5 = smov 4  }
  0xc1   : > { %494 = dma.vmem_to_hbm [thread:$0]  (%p693_p4), %s333_s18, 128, %s335_s19, %s318_s21, %s631_s4, %s631_s4, %s632_s5  }
  0xc2 PF: > { %p500_p6 = scmp.ge.s32.totalorder %s629_s17, 2  ;;  %s349_s6 = sand.u32 1, %s609_s12  }
  0xc3   : > { %s350_s7 = scalar_lea.sflag [#allocation3], %s349_s6 }
  0xc4   : > { %p497_p7 = pnand %p500_p6, %p700_p8 }
  0xc6   : > { %p498_p9 = pneg %p497_p7 }
  0xc8   : > { %604 = dma.done.wait (%p498_p9), %s350_s7, 128  }
  0xc9   : > { %606 = vsyncadd (%p498_p9), %s350_s7, 4294967168  ;;  %s16_s17 = sadd.s32 1, %s629_s17   ;;  %s783_s12 = smov %s613_s13 }
  0xca   : > { %p13_p10 = scmp.ge.s32.totalorder %s16_s17, 4   ;;  %s784_s13 = smov %s617_s14 }
  0xcb   : > { %s785_s14 = smov %s706_s25  ;;  %s786_s15 = smov %s625_s16 }
  0xcc   : > { %s787_s16 = smov %s789_s20  ;;  %15 = sbr.rel (!%p13_p10) target bundleno = 4 (0x4), region = 70 }
  0xd1   :  { %356 = vsyncpa [#allocation3], 1 }
  0xd2   :  { %358 = vsyncpa [#allocation3 + $0x1], 1 }

</bundles_post_ra>
